<compile_context>
chip_gen: v7x
topology: tpu7x:2x2x1
jax: 0.10.0
libtpu: 0.0.40
codegen_flags: <defaults>
</compile_context>

<pallas_src>
import functools

import numpy as np
import jax
import jax.numpy as jnp
from jax.experimental import pallas as pl
from jax.experimental.pallas import tpu as pltpu

CLS_NUM_LIST = [2780, 2050, 430, 3640, 4065, 535, 556, 410, 86, 728,
                813, 107, 556, 410, 86, 728, 813, 107]
MAX_M = 0.5
S = 30.0


def _make_m_list():
    m = 1.0 / np.sqrt(np.asarray(CLS_NUM_LIST, dtype=np.float64))
    m = m * (MAX_M / np.max(m))
    return jnp.asarray(m, dtype=jnp.float32)          # (C,)


def _round_up(a, b):
    return -(-a // b) * b


def ldam_kernel(x_ref, tgt_ref, m_ref, out_ref, *, n_rows, tile_n, s):
    # Lane-dense layout: classes on sublanes, batch on lanes.
    x = x_ref[...].astype(jnp.float32)                 # (C, tile_n)
    tgt = tgt_ref[...]                                 # (1, tile_n) i32
    m = m_ref[...]                                     # (C, 1)      f32

    # boolean one-hot mask via iota-compare (== torch scatter_ on dim 1)
    cls_ids = jax.lax.broadcasted_iota(jnp.int32, x.shape, 0)
    mask = cls_ids == tgt                              # (C, tile_n) bool

    # where(onehot, x - m[target], x) == x - m * onehot  (single VPU select)
    z = s * (x - jnp.where(mask, m, 0.0))              # (C, tile_n)

    # stabilized log-sum-exp; reductions run over the (short) sublane axis
    zmax = jnp.max(z, axis=0, keepdims=True)           # (1, tile_n)
    lse = jnp.log(jnp.sum(jnp.exp(z - zmax), axis=0, keepdims=True)) + zmax
    z_t = jnp.sum(jnp.where(mask, z, 0.0), axis=0, keepdims=True)

    # drop the ragged tail of the last tile (boolean select: OOB garbage,
    # even NaN/Inf, cannot propagate into valid columns)
    col = (pl.program_id(0) * tile_n
           + jax.lax.broadcasted_iota(jnp.int32, (1, tile_n), 1))
    contrib = jnp.where(col < n_rows, lse - z_t, 0.0)
    total = jnp.sum(contrib)                           # per-tile partial sum

    # write the scalar into an (8,128)-aligned block (element [0,0]); the
    # rest is zero so the JAX-side sum over partials stays exact.
    r = jax.lax.broadcasted_iota(jnp.int32, (8, 128), 0)
    c = jax.lax.broadcasted_iota(jnp.int32, (8, 128), 1)
    out_ref[...] = jnp.where((r == 0) & (c == 0), total, 0.0)


def ldam_loss(x, target, m_list, *, s=S, tile_n=8192):
    n, c = x.shape

    # Lane-dense layout plumbing: batch on the 128-lane axis.
    xt = x.T                                           # (C, N)
    tgt = target.astype(jnp.int32).reshape(1, n)       # (1, N)
    m2 = m_list.reshape(c, 1).astype(jnp.float32)      # (C, 1)

    if n <= 256:
        tile = n                                       # single full-extent tile
    else:
        # lane-aligned tiles; cap so the grid has >= 2 balanced tiles (v7x
        # has 2 TensorCores and the axis is marked "parallel")
        tile = max(128, min(int(tile_n), _round_up(pl.cdiv(n, 2), 128)))
    num_tiles = pl.cdiv(n, tile)

    kernel = functools.partial(ldam_kernel, n_rows=n, tile_n=tile, s=float(s))

    partials = pl.pallas_call(
        kernel,
        out_shape=jax.ShapeDtypeStruct((num_tiles * 8, 128), jnp.float32),
        grid=(num_tiles,),
        in_specs=[
            pl.BlockSpec((c, tile), lambda i: (0, i)),   # logits tile (C, tile)
            pl.BlockSpec((1, tile), lambda i: (0, i)),   # target row  (1, tile)
            pl.BlockSpec((c, 1), lambda i: (0, 0)),      # m_list (resident)
        ],
        out_specs=pl.BlockSpec((8, 128), lambda i: (i, 0)),
        compiler_params=pltpu.CompilerParams(
            dimension_semantics=("parallel",)),
    )(xt, tgt, m2)

    return jnp.sum(partials) / jnp.float32(n)


def _ref_loss(x, target, m_list):
    # pure-JAX reference for sanity checking
    onehot = jax.nn.one_hot(target, x.shape[1], dtype=jnp.float32)
    batch_m = (onehot * m_list[None, :]).sum(axis=1, keepdims=True)
    output = jnp.where(onehot > 0, x - batch_m, x)
    z = S * output
    logp = jax.nn.log_softmax(z, axis=1)
    return -jnp.mean(jnp.sum(logp * onehot, axis=1))


if __name__ == "__main__":
    key = jax.random.PRNGKey(0)
    m_list = _make_m_list()
    C = len(CLS_NUM_LIST)                              # 18 classes

    # small test: single full-extent tile
    kx, kt = jax.random.split(key)
    N = 8
    x = jax.random.normal(kx, (N, C), dtype=jnp.float32)
    target = jax.random.randint(kt, (N,), 0, C, dtype=jnp.int32)

    loss = jax.block_until_ready(ldam_loss(x, target, m_list))
    ref = _ref_loss(x, target, m_list)
    assert jnp.allclose(loss, ref, rtol=1e-5, atol=1e-5), (loss, ref)

    # second test: multi-tile grid with a ragged last tile (no padding path)
    kx2, kt2 = jax.random.split(kt)
    N2 = 300
    x2 = jax.random.normal(kx2, (N2, C), dtype=jnp.float32)
    target2 = jax.random.randint(kt2, (N2,), 0, C, dtype=jnp.int32)

    loss2 = jax.block_until_ready(ldam_loss(x2, target2, m_list))
    ref2 = _ref_loss(x2, target2, m_list)
    assert jnp.allclose(loss2, ref2, rtol=1e-5, atol=1e-5), (loss2, ref2)

    print("KERNEL_OK")
</pallas_src>

<mosaic_0001>
module attributes {stable_mosaic.version = 11 : i64} {
  func.func @ldam_kernel(%arg0: i32, %arg1: memref<18x8xf32, #tpu.memory_space<vmem>>, %arg2: memref<1x8xi32, #tpu.memory_space<vmem>>, %arg3: memref<18x1xf32, #tpu.memory_space<vmem>>, %arg4: memref<8x128xf32, #tpu.memory_space<vmem>>) attributes {dimension_semantics = [#tpu.dimension_semantics<parallel>], iteration_bounds = array<i64: 1>, scalar_prefetch = 0 : i64, scratch_operands = 0 : i64, tpu.core_type = #tpu.core_type<tc>, window_params = [{transform_indices = @transform_0, window_bounds = array<i64: 18, 8>}, {transform_indices = @transform_1, window_bounds = array<i64: 1, 8>}, {pipeline_mode = #tpu.pipeline_mode<synchronous>, transform_indices = @transform_2, window_bounds = array<i64: 18, 1>}, {transform_indices = @transform_3, window_bounds = array<i64: 8, 128>}]} {
    %c0 = arith.constant 0 : index
    %c0_0 = arith.constant 0 : index
    %0 = vector.load %arg1[%c0, %c0_0] : memref<18x8xf32, #tpu.memory_space<vmem>>, vector<18x8xf32>
    %c0_1 = arith.constant 0 : index
    %c0_2 = arith.constant 0 : index
    %1 = vector.load %arg2[%c0_1, %c0_2] : memref<1x8xi32, #tpu.memory_space<vmem>>, vector<1x8xi32>
    %c0_3 = arith.constant 0 : index
    %c0_4 = arith.constant 0 : index
    %2 = vector.load %arg3[%c0_3, %c0_4] : memref<18x1xf32, #tpu.memory_space<vmem>>, vector<18x1xf32>
    %3 = tpu.iota {dimensions = array<i32: 0>} : vector<18x8xi32>
    %4 = vector.broadcast %1 : vector<1x8xi32> to vector<18x8xi32>
    %5 = arith.cmpi eq, %3, %4 : vector<18x8xi32>
    %cst = arith.constant 0.000000e+00 : f32
    %6 = vector.shape_cast %2 : vector<18x1xf32> to vector<18x1xf32>
    %7 = vector.broadcast %6 : vector<18x1xf32> to vector<18x8xf32>
    %8 = vector.broadcast %cst : f32 to vector<18x8xf32>
    %9 = arith.select %5, %7, %8 : vector<18x8xi1>, vector<18x8xf32>
    %10 = arith.subf %0, %9 : vector<18x8xf32>
    %cst_5 = arith.constant 3.000000e+01 : f32
    %11 = vector.broadcast %cst_5 : f32 to vector<18x8xf32>
    %12 = arith.mulf %11, %10 : vector<18x8xf32>
    %cst_6 = arith.constant dense<0xFF800000> : vector<8xf32>
    %13 = vector.multi_reduction <maximumf>, %12, %cst_6 [0] : vector<18x8xf32> to vector<8xf32>
    %14 = vector.shape_cast %13 : vector<8xf32> to vector<1x8xf32>
    %15 = vector.broadcast %14 : vector<1x8xf32> to vector<18x8xf32>
    %16 = arith.subf %12, %15 : vector<18x8xf32>
    %17 = math.exp %16 : vector<18x8xf32>
    %cst_7 = arith.constant dense<0.000000e+00> : vector<8xf32>
    %18 = vector.multi_reduction <add>, %17, %cst_7 [0] : vector<18x8xf32> to vector<8xf32>
    %19 = vector.shape_cast %18 : vector<8xf32> to vector<1x8xf32>
    %20 = math.log %19 : vector<1x8xf32>
    %21 = arith.addf %20, %14 : vector<1x8xf32>
    %cst_8 = arith.constant 0.000000e+00 : f32
    %22 = vector.broadcast %cst_8 : f32 to vector<18x8xf32>
    %23 = arith.select %5, %12, %22 : vector<18x8xi1>, vector<18x8xf32>
    %cst_9 = arith.constant dense<0.000000e+00> : vector<8xf32>
    %24 = vector.multi_reduction <add>, %23, %cst_9 [0] : vector<18x8xf32> to vector<8xf32>
    %25 = vector.shape_cast %24 : vector<8xf32> to vector<1x8xf32>
    %c8_i32 = arith.constant 8 : i32
    %26 = arith.muli %arg0, %c8_i32 : i32
    %27 = tpu.iota {dimensions = array<i32: 1>} : vector<1x8xi32>
    %28 = vector.broadcast %26 : i32 to vector<1x8xi32>
    %29 = arith.addi %28, %27 : vector<1x8xi32>
    %c8_i32_10 = arith.constant 8 : i32
    %30 = vector.broadcast %c8_i32_10 : i32 to vector<1x8xi32>
    %31 = arith.cmpi slt, %29, %30 : vector<1x8xi32>
    %32 = arith.subf %21, %25 : vector<1x8xf32>
    %cst_11 = arith.constant 0.000000e+00 : f32
    %33 = vector.broadcast %cst_11 : f32 to vector<1x8xf32>
    %34 = arith.select %31, %32, %33 : vector<1x8xi1>, vector<1x8xf32>
    %35 = vector.shape_cast %34 : vector<1x8xf32> to vector<1x1x8xf32>
    %cst_12 = arith.constant dense<0.000000e+00> : vector<1xf32>
    %36 = vector.multi_reduction <add>, %35, %cst_12 [1, 2] : vector<1x1x8xf32> to vector<1xf32>
    %37 = vector.shape_cast %36 : vector<1xf32> to vector<1x1x1xf32>
    %38 = vector.extract %37[0, 0, 0] : f32 from vector<1x1x1xf32>
    %39 = tpu.iota {dimensions = array<i32: 0>} : vector<8x128xi32>
    %40 = tpu.iota {dimensions = array<i32: 1>} : vector<8x128xi32>
    %c0_i32 = arith.constant 0 : i32
    %41 = vector.broadcast %c0_i32 : i32 to vector<8x128xi32>
    %42 = arith.cmpi eq, %39, %41 : vector<8x128xi32>
    %c0_i32_13 = arith.constant 0 : i32
    %43 = vector.broadcast %c0_i32_13 : i32 to vector<8x128xi32>
    %44 = arith.cmpi eq, %40, %43 : vector<8x128xi32>
    %45 = arith.andi %42, %44 : vector<8x128xi1>
    %cst_14 = arith.constant 0.000000e+00 : f32
    %46 = vector.broadcast %38 : f32 to vector<8x128xf32>
    %47 = vector.broadcast %cst_14 : f32 to vector<8x128xf32>
    %48 = arith.select %45, %46, %47 : vector<8x128xi1>, vector<8x128xf32>
    %c0_15 = arith.constant 0 : index
    %c0_16 = arith.constant 0 : index
    %49 = vector.load %arg4[%c0_15, %c0_16] : memref<8x128xf32, #tpu.memory_space<vmem>>, vector<8x128xf32>
    tpu.vector_store %arg4[%c0_15, %c0_16], %48 {strides = array<i32>} : memref<8x128xf32, #tpu.memory_space<vmem>>, vector<8x128xf32>,
    return
  }
  func.func @transform_0(%arg0: i32) -> (i32, i32) {
    %c0_i32 = arith.constant 0 : i32
    %c0_i32_0 = arith.constant 0 : i32
    return %c0_i32, %arg0 : i32, i32
  }
  func.func @transform_1(%arg0: i32) -> (i32, i32) {
    %c0_i32 = arith.constant 0 : i32
    %c0_i32_0 = arith.constant 0 : i32
    return %c0_i32, %arg0 : i32, i32
  }
  func.func @transform_2(%arg0: i32) -> (i32, i32) {
    %c0_i32 = arith.constant 0 : i32
    %c0_i32_0 = arith.constant 0 : i32
    %c0_i32_1 = arith.constant 0 : i32
    return %c0_i32, %c0_i32_0 : i32, i32
  }
  func.func @transform_3(%arg0: i32) -> (i32, i32) {
    %c0_i32 = arith.constant 0 : i32
    %c0_i32_0 = arith.constant 0 : i32
    return %arg0, %c0_i32 : i32, i32
  }
}

</mosaic_0001>

<bundles_post_ra>
// kernel: tpu_custom_call.1
= control target key start
LH: loop header
LB: loop body
LE: loop exit
PB: predicated region body
PF: predicated region fallthrough
CT: control target
= control target key end

     0   :  { %v185_v2 = vmov 0   ;;  %s265_s0 = inlined_call_operand.vmem [shape: f32[18,8], index: 0, kind: input, shape index: {}]   ;;  %s266_s1 = inlined_call_operand.vmem [shape: s32[1,8], index: 1, kind: input, shape index: {}]   ;;  %s267_s2 = inlined_call_operand.vmem [shape: f32[18,1], index: 2, kind: input, shape index: {}]   ;;  %s268_s3 = inlined_call_operand.hbm [shape: f32[8,128], index: 3, kind: output, shape index: {}]  }
   0x1   :  { %v19_v0 = vld [vmem:[%s267_s2] sm:$0xff]  ;;  %v21_v1 = vld [vmem:[%s267_s2 + $0x10] sm:$0x3]  ;;  %151 = vset.pattern.permute.xlu0 %v185_v2  ;;  %152 = vset.pattern.permute.xlu1 %v185_v2 }
   0x2   :  { %8 = vsyncpa [#allocation3], 0  ;;  %35 = vperm.xlu0 %151, %v19_v0   ;;  %45 = vperm.xlu1 %152, %v21_v1   ;;  %v20_v3 = vld [vmem:[%s267_s2 + $0x8] sm:$0xff]  ;;  %v22_v4 = vlaneseq  ;;  %v146_v7 = vld [vmem:[%s266_s1] ss:$0 sm:$0xff]  ;;  %vm57_vm3 = vcmask 64512  }
   0x3   :  { %v15_v9 = vld [vmem:[%s265_s0] sm:$0xff]  ;;  %v17_v10 = vld [vmem:[%s265_s0 + $0x10] sm:$0x3]  ;;  %v16_v17 = vld [vmem:[%s265_s0 + $0x8] sm:$0xff]  ;;  %vm60_vm4 = vcmask 58368   ;;  %vm115_vm6 = vcmask 57344  }
   0x4   :  { %v217_v5 = vshrl.u32 %v22_v4, 7  ;;  %s186_s0 = smov [#allocation2]  }
   0x5   :  { %s138_s24 = sshll.u32 %s186_s0, 4  ;;  %s139_s24 = int_to_ptr.vmem [resolvable:$true] %s138_s24 }
   0x6   :  { %40 = vperm.xlu0 %151, %v20_v3   ;;  %v25_v6 = vadd.s32 16, %v217_v5  ;;  %vm30_vm0 = vcmp.eq.s32.totalorder %v217_v5, %v146_v7  ;;  %v24_v8 = vadd.s32 8, %v217_v5  ;;  %vm126_vm7 = vcmp.eq.s32.totalorder %v217_v5, 0  ;;  %s161_s26 = scalar_lea.vmem %s139_s24, 128  ;;  %p166_p1 = scmp.lt.s32.totalorder %s139_s24, %s139_s24 }
   0x7   :  { %p162_p0 = scmp.ne.s32.totalorder %s139_s24, %s161_s26  ;;  %p167_p2 = scmp.lt.s32.totalorder %s161_s26, %s161_s26 }
   0x8   :  { %vm32_vm1 = vcmp.eq.s32.totalorder %v25_v6, %v146_v7  ;;  %vm31_vm2 = vcmp.eq.s32.totalorder %v24_v8, %v146_v7  ;;  %v109_v7 = vand.u32 127, %v22_v4 }
   0x9   :  { %p168_p3 = por %p167_p2, %p166_p1 }
   0xa   :  { %vm112_vm5 = vcmp.lt.s32.totalorder %v109_v7, 8  ;;  %vm127_vm8 = vcmp.eq.s32.totalorder %v109_v7, 0 }
   0xb   :  { %vm128_vm9 = vmand %vm126_vm7, %vm127_vm8  ;;  %p169_p4 = pnand %p168_p3, %p162_p0 }
  0x81   :  { %v36_v11 = vpop.permute.xlu0 %35  ;;  %v46_v12 = vpop.permute.xlu1 %45 }
  0x82   :  { %v48_v13 = vsel %vm30_vm0, %v36_v11, 0.0  ;;  %v50_v14 = vsel %vm32_vm1, %v46_v12, 0.0 }
  0x83   :  { %v51_v15 = vsub.f32 %v15_v9, %v48_v13  ;;  %v53_v16 = vsub.f32 %v17_v10, %v50_v14 }
  0x85   :  { %v41_v18 = vpop.permute.xlu0 %40  ;;  %v54_v20 = vmul.f32 30.0, %v51_v15  ;;  %v56_v22 = vmul.f32 30.0, %v53_v16 }
  0x86   :  { %v49_v19 = vsel %vm31_vm2, %v41_v18, 0.0 }
  0x87   :  { %v52_v21 = vsub.f32 %v16_v17, %v49_v19  ;;  %v58_v24 = vsel %vm57_vm3, %v54_v20, -inf  ;;  %v61_v26 = vsel %vm60_vm4, %v56_v22, -inf  ;;  %v93_v43 = vsel %vm30_vm0, %v54_v20, 0.0 }
  0x88   :  { %v95_v49 = vsel %vm32_vm1, %v56_v22, 0.0  ;;  %v96_v50 = vsel %vm57_vm3, %v93_v43, 0.0 }
  0x89   :  { %v55_v23 = vmul.f32 30.0, %v52_v21  ;;  %v99_v55 = vsel %vm60_vm4, %v95_v49, 0.0 }
  0x8b   :  { %v59_v25 = vsel %vm57_vm3, %v55_v23, -inf  ;;  %v94_v41 = vsel %vm31_vm2, %v55_v23, 0.0 }
  0x8c   :  { %v62_v27 = vmax.f32 %v58_v24, %v59_v25  ;;  %v97_v45 = vsel %vm57_vm3, %v94_v41, 0.0 }
  0x8d   :  { %v98_v52 = vadd.f32 %v97_v45, %v96_v50 }
  0x8e   :  { %v63_v28 = vmax.f32 %v62_v27, %v61_v26 }
  0x8f   :  { %v100_v57 = vadd.f32 %v99_v55, %v98_v52 }
  0x90   :  { %v64_v29 = vrot.slane %v63_v28, 4 }
  0x91   :  { %v101_v60 = vrot.slane %v100_v57, 4 }
  0x92   :  { %v65_v30 = vmax.f32 %v63_v28, %v64_v29 }
  0x93   :  { %v102_v63 = vadd.f32 %v101_v60, %v100_v57 }
  0x94   :  { %v66_v31 = vrot.slane %v65_v30, 2 }
  0x95   :  { %v103_v1 = vrot.slane %v102_v63, 2 }
  0x96   :  { %v67_v32 = vmax.f32 %v65_v30, %v66_v31 }
  0x97   :  { %v104_v2 = vadd.f32 %v103_v1, %v102_v63 }
  0x98   :  { %v68_v33 = vrot.slane %v67_v32, 1 }
  0x99   :  { %v105_v3 = vrot.slane %v104_v2, 1 }
  0x9a   :  { %v69_v34 = vmax.f32 %v67_v32, %v68_v33 }
  0x9b   :  { %v106_v10 = vadd.f32 %v105_v3, %v104_v2 }
  0x9c   :  { %v70_v35 = vsub.f32 %v54_v20, %v69_v34  ;;  %v71_v36 = vsub.f32 %v55_v23, %v69_v34  ;;  %v72_v37 = vsub.f32 %v56_v22, %v69_v34 }
  0x9e   :  { %v73_v38 = vmul.f32 1.442695, %v70_v35  ;;  %v75_v39 = vmul.f32 1.442695, %v71_v36  ;;  %v77_v40 = vmul.f32 1.442695, %v72_v37 }
  0xa0   :  { %153 = vpow2.f32 %v73_v38 }
  0xa1   :  { %155 = vpow2.f32 %v75_v39 }
  0xa2   :  { %157 = vpow2.f32 %v77_v40 }
  0xaa   :  { %v154_v42 = vpop.eup %153 }
  0xab   :  { %v156_v44 = vpop.eup %155  ;;  %v79_v46 = vsel %vm57_vm3, %v154_v42, 0.0 }
  0xac   :  { %v158_v47 = vpop.eup %157  ;;  %v80_v48 = vsel %vm57_vm3, %v156_v44, 0.0 }
  0xad   :  { %v81_v51 = vadd.f32 %v80_v48, %v79_v46  ;;  %v82_v53 = vsel %vm60_vm4, %v158_v47, 0.0 }
  0xaf   :  { %v83_v54 = vadd.f32 %v82_v53, %v81_v51 }
  0xb1   :  { %v84_v56 = vrot.slane %v83_v54, 4 }
  0xb3   :  { %v85_v58 = vadd.f32 %v84_v56, %v83_v54 }
  0xb5   :  { %v86_v59 = vrot.slane %v85_v58, 2 }
  0xb7   :  { %v87_v61 = vadd.f32 %v86_v59, %v85_v58 }
  0xb9   :  { %v88_v62 = vrot.slane %v87_v61, 1 }
  0xbb   :  { %v89_v0 = vadd.f32 %v88_v62, %v87_v61 }
  0xbd   :  { %159 = vlog2.f32 %v89_v0 }
  0xc7   :  { %v160_v6 = vpop.eup %159 }
  0xc8   :  { %v91_v8 = vmul.f32 0.6931472, %v160_v6 }
  0xca   :  { %v92_v9 = vadd.f32 %v91_v8, %v69_v34 }
  0xcc   :  { %v113_v11 = vsub.f32 %v92_v9, %v106_v10 }
  0xce   :  { %v114_v12 = vsel %vm112_vm5, %v113_v11, 0.0 }
  0xcf   :  { %v116_v13 = vsel %vm115_vm6, %v114_v12, 0.0 }
  0xd0   :  { %117 = vadd.xlane.f32.xlu1 %v116_v13 }
 0x15d   :  { %v118_v14 = vpop.xlane.xlu1 %117 }
 0x15e   :  { %v119_v15 = vrot.slane %v118_v14, 4 }
 0x160   :  { %v120_v16 = vadd.f32 %v119_v15, %v118_v14 }
 0x162   :  { %v121_v17 = vrot.slane %v120_v16, 2 }
 0x164   :  { %v122_v18 = vadd.f32 %v121_v17, %v120_v16 }
 0x166   :  { %v123_v19 = vrot.slane %v122_v18, 1 }
 0x168   :  { %v124_v20 = vadd.f32 %v123_v19, %v122_v18 }
 0x16a   :  { %147 = vpush %v124_v20 }
 0x19b   :  { %s148_s25 = spop %147 }
 0x19c   :  { %v129_v4 = vstv %s148_s25 }
 0x19d   :  { %v130_v21 = vsel %vm128_vm9, %v129_v4, 0.0 }
 0x19e   :  { %131 = vst [vmem:[#allocation2] sm:$0xff] %v130_v21 }
 0x19f   :  { %172 = shalt.err (!%p169_p4)
}
 0x1a0   :  { %s173_s29 = scalar_lea.hbm %s268_s3, 128 }
 0x1a1   :  { %p174_p5 = scmp.ne.s32.totalorder %s268_s3, %s173_s29  ;;  %p177_p6 = scmp.lt.u32.totalorder %s173_s29, %s268_s3 }
 0x1a3   :  { %p179_p7 = pnand %p177_p6, %p174_p5 }
 0x1a5   :  { %182 = shalt.err (!%p179_p7)
}
 0x1a6   :  { %141 = dma.vmem_to_hbm [thread:$0]  %s139_s24, 128, %s268_s3, [#allocation3]  }
 0x1a7   :  { %183 = dma.done.wait [#allocation3], 128  }
 0x1a8   :  { %184 = vsyncadd [#allocation3], 4294967168 }
 0x1a9   :  { %145 = vsyncpa [#allocation3], 1 }

</bundles_post_ra>
